<compile_context>
chip_gen: v5e
topology: v5e:2x2
jax: 0.10.0
libtpu: 0.0.40
codegen_flags: <defaults>
</compile_context>

<pallas_src>
import jax
import jax.numpy as jnp
from jax.experimental import pallas as pl
from jax.experimental.pallas import tpu as pltpu

_LANE = 128                 # vreg lane width; last dim of every block.
_MIN_GRID_STEPS = 8         # target >= 8 tiles so v7x's 2 TCs both stream HBM.
_MAX_BLOCK_BYTES = 2 << 20  # 2 MiB per pipelined buffer; 2 bufs x (in+out) = 8 MiB,
                            # comfortably under every generation's scoped-VMEM default.


def _linreg_kernel(w_ref, b_ref, x_ref, o_ref):
    # w_ref / b_ref: (1,)-shaped scalars in SMEM. x_ref / o_ref: lane-dense
    # (block_rows, 128) VMEM tiles.  Pure VPU elementwise affine, HBM-bound.
    w = w_ref[0]
    b = b_ref[0]
    o_ref[...] = (x_ref[...] * w + b).astype(o_ref.dtype)


def _round_up(a: int, b: int) -> int:
    return ((a + b - 1) // b) * b


def _sublane_multiple(dtype) -> int:
    # Minimum second-minor tile is dtype dependent: 8 rows (4B), 16 (2B), 32 (1B).
    return max(8, 32 // jnp.dtype(dtype).itemsize)


def _pick_block_rows(rows: int, tile_rows: int, sublane: int, itemsize: int) -> int:
    # Cap per-buffer size (VMEM budget, v7x-safe) and honor the sublane minimum.
    max_rows = max(sublane, (_MAX_BLOCK_BYTES // (_LANE * itemsize)) // sublane * sublane)
    tile_rows = min(max(_round_up(tile_rows, sublane), sublane), max_rows)
    if rows > tile_rows:
        return tile_rows
    # Medium input: split into >= _MIN_GRID_STEPS tiles (when the sublane
    # constraint allows) so the "parallel" axis shards across v7x's two cores.
    block_rows = _round_up(pl.cdiv(rows, _MIN_GRID_STEPS), sublane)
    return min(max(block_rows, sublane), tile_rows)


def linear_regression_forward(
    x: jax.Array,
    weights: jax.Array,
    bias: jax.Array,
    *,
    tile_rows: int = 2048,
    min_pallas_elements: int = 1 << 20,
) -> jax.Array:
    """Computes weights * x + bias (scalar affine), matching the nn.Module forward.

    Any input shape/dtype.  Small inputs use plain JAX (XLA fuses the affine and a
    Pallas launch is pure overhead).  Large inputs stream through a lane-dense
    (rows, 128) Pallas kernel with no pad/un-pad copies; a non-lane-aligned tail
    (< 128 elements) is computed with plain JAX and stitched back on.
    """
    orig_shape = x.shape
    n = x.size
    w = jnp.ravel(weights)
    b = jnp.ravel(bias)

    def scalar_affine(v):
        return (w[0] * v + b[0]).astype(v.dtype)

    n_bulk = (n // _LANE) * _LANE
    if n < min_pallas_elements or n_bulk == 0:
        return scalar_affine(x)

    x_flat = jnp.ravel(x)
    # Lane-aligned bulk: zero-copy view when n % 128 == 0, prefix slice otherwise.
    bulk = x_flat if n_bulk == n else x_flat[:n_bulk]
    rows = n_bulk // _LANE
    x2d = bulk.reshape(rows, _LANE)

    sublane = _sublane_multiple(x.dtype)
    itemsize = jnp.dtype(x.dtype).itemsize
    block_rows = _pick_block_rows(rows, tile_rows, sublane, itemsize)
    # Ragged last block (rows % block_rows != 0) is handled by masked edge stores.
    grid = (pl.cdiv(rows, block_rows),)

    out2d = pl.pallas_call(
        _linreg_kernel,
        out_shape=jax.ShapeDtypeStruct((rows, _LANE), x.dtype),
        grid=grid,
        in_specs=[
            pl.BlockSpec(memory_space=pltpu.MemorySpace.SMEM),   # weights (1,)
            pl.BlockSpec(memory_space=pltpu.MemorySpace.SMEM),   # bias (1,)
            pl.BlockSpec((block_rows, _LANE), lambda i: (i, 0)),  # x tile in VMEM
        ],
        out_specs=pl.BlockSpec((block_rows, _LANE), lambda i: (i, 0)),
        compiler_params=pltpu.CompilerParams(
            dimension_semantics=("parallel",),
        ),
    )(w, b, x2d)

    out_flat = out2d.reshape(-1)                     # exactly n_bulk elements; no un-pad slice
    if n_bulk != n:
        out_flat = jnp.concatenate([out_flat, scalar_affine(x_flat[n_bulk:])])
    return out_flat.reshape(orig_shape)


if __name__ == "__main__":
    key = jax.random.PRNGKey(0)
    k_w, k_b, k_x1, k_x2, k_x3 = jax.random.split(key, 5)

    # Deterministic parameter init, mirroring torch.randn(1) for weights and bias.
    weights = jax.random.normal(k_w, (1,), dtype=jnp.float32)
    bias = jax.random.normal(k_b, (1,), dtype=jnp.float32)

    def ref(v):
        return weights[0] * v + bias[0]

    # Case 1: the workflow's canonical (N, 1) column (N = 50).  Below the lane
    # width, so it takes the fused plain-JAX fast path (by design).
    x1 = jax.random.normal(k_x1, (50, 1), dtype=jnp.float32)
    o1 = jax.block_until_ready(linear_regression_forward(x1, weights, bias))
    assert o1.shape == x1.shape and o1.dtype == x1.dtype
    assert jnp.allclose(o1, ref(x1), atol=1e-6, rtol=1e-6)

    # Case 2: lane-aligned input (2048 = 16 rows x 128); force the Pallas path
    # with a small tile so the multi-step pipelined/parallel grid is exercised.
    x2 = jax.random.normal(k_x2, (2048, 1), dtype=jnp.float32)
    o2 = jax.block_until_ready(
        linear_regression_forward(
            x2, weights, bias, tile_rows=8, min_pallas_elements=0
        )
    )
    assert o2.shape == x2.shape and o2.dtype == x2.dtype
    assert jnp.allclose(o2, ref(x2), atol=1e-6, rtol=1e-6)

    # Case 3: non-lane-aligned input (1100 elements): 1024-element bulk through
    # Pallas, 76-element tail through the scalar path, stitched back together.
    x3 = jax.random.normal(k_x3, (1100, 1), dtype=jnp.float32)
    o3 = jax.block_until_ready(
        linear_regression_forward(x3, weights, bias, min_pallas_elements=0)
    )
    assert o3.shape == x3.shape and o3.dtype == x3.dtype
    assert jnp.allclose(o3, ref(x3), atol=1e-6, rtol=1e-6)

    print("KERNEL_OK")
</pallas_src>

<mosaic_0001>
module attributes {stable_mosaic.version = 11 : i64} {
  func.func @_linreg_kernel(%arg0: i32, %arg1: memref<1xf32, #tpu.memory_space<smem>>, %arg2: memref<1xf32, #tpu.memory_space<smem>>, %arg3: memref<8x128xf32, #tpu.memory_space<vmem>>, %arg4: memref<8x128xf32, #tpu.memory_space<vmem>>) attributes {dimension_semantics = [#tpu.dimension_semantics<parallel>], iteration_bounds = array<i64: 2>, scalar_prefetch = 0 : i64, scratch_operands = 0 : i64, tpu.core_type = #tpu.core_type<tc>, window_params = [{transform_indices = @transform_0, window_bounds = array<i64: 1>}, {transform_indices = @transform_1, window_bounds = array<i64: 1>}, {transform_indices = @transform_2, window_bounds = array<i64: 8, 128>}, {transform_indices = @transform_3, window_bounds = array<i64: 8, 128>}]} {
    %c0 = arith.constant 0 : index
    %0 = memref.load %arg1[%c0] : memref<1xf32, #tpu.memory_space<smem>>
    %c0_0 = arith.constant 0 : index
    %1 = memref.load %arg2[%c0_0] : memref<1xf32, #tpu.memory_space<smem>>
    %c0_1 = arith.constant 0 : index
    %c0_2 = arith.constant 0 : index
    %2 = vector.load %arg3[%c0_1, %c0_2] : memref<8x128xf32, #tpu.memory_space<vmem>>, vector<8x128xf32>
    %3 = vector.broadcast %0 : f32 to vector<8x128xf32>
    %4 = arith.mulf %2, %3 : vector<8x128xf32>
    %5 = vector.broadcast %1 : f32 to vector<8x128xf32>
    %6 = arith.addf %4, %5 : vector<8x128xf32>
    %c0_3 = arith.constant 0 : index
    %c0_4 = arith.constant 0 : index
    %7 = vector.load %arg4[%c0_3, %c0_4] : memref<8x128xf32, #tpu.memory_space<vmem>>, vector<8x128xf32>
    tpu.vector_store %arg4[%c0_3, %c0_4], %6 {strides = array<i32>} : memref<8x128xf32, #tpu.memory_space<vmem>>, vector<8x128xf32>,
    return
  }
  func.func @transform_0(%arg0: i32) -> i32 {
    %c0_i32 = arith.constant 0 : i32
    %c0_i32_0 = arith.constant 0 : i32
    return %c0_i32 : i32
  }
  func.func @transform_1(%arg0: i32) -> i32 {
    %c0_i32 = arith.constant 0 : i32
    %c0_i32_0 = arith.constant 0 : i32
    return %c0_i32 : i32
  }
  func.func @transform_2(%arg0: i32) -> (i32, i32) {
    %c0_i32 = arith.constant 0 : i32
    %c0_i32_0 = arith.constant 0 : i32
    return %arg0, %c0_i32 : i32, i32
  }
  func.func @transform_3(%arg0: i32) -> (i32, i32) {
    %c0_i32 = arith.constant 0 : i32
    %c0_i32_0 = arith.constant 0 : i32
    return %arg0, %c0_i32 : i32, i32
  }
}

</mosaic_0001>

<bundles_post_ra>
// kernel: tpu_custom_call.1
= control target key start
LH: loop header
LB: loop body
LE: loop exit
PB: predicated region body
PF: predicated region fallthrough
CT: control target
= control target key end

     0   :  { %s593_s0 = inlined_call_operand.<no memory space> [shape: f32[1], index: 0, kind: input, shape index: {}]   ;;  %s594_s1 = inlined_call_operand.<no memory space> [shape: f32[1], index: 1, kind: input, shape index: {}]   ;;  %s595_s2 = inlined_call_operand.hbm [shape: f32[16,128], index: 2, kind: input, shape index: {}]   ;;  %s596_s3 = inlined_call_operand.hbm [shape: f32[16,128], index: 3, kind: output, shape index: {}]  }
   0x1   :  { %8 = sst [smem:[#allocation2]] %s593_s0 }
   0x2   :  { %9 = sst [smem:[#allocation3]] %s594_s1 }
   0x3   :  { %10 = vsyncpa [#allocation5], 0 }
   0x4   :  { %12 = vsyncpa [#allocation5 + $0x1], 0 }
   0x5   :  { %13 = vsyncpa [#allocation6], 0 }
   0x6   :  { %15 = vsyncpa [#allocation6 + $0x1], 0  ;;  %s466_s16 = smov 0   ;;  %s468_s17 = smov 0  }
   0x7   :  { %s470_s18 = smov 0   ;;  %s472_s19 = smov 0  }
   0x8 LB: > { %s487_s0 = sadd.s32 4294967295, %s438_s19   ;;  %s284_s1 = sadd.s32 4294967294, %s438_s19   ;;  %s438_s19 = sphi %s472_s19, %s606_s19   ;;  %s434_s18 = sphi %s470_s18, %s605_s18   ;;  %s430_s17 = sphi %s468_s17, %s604_s17   ;;  %s426_s16 = sphi %s466_s16, %s603_s16  }
   0x9   : > { %s491_s20 = sadd.s32 1, %s438_s19   ;;  %s70_s21 = sadd.s32 1, %s434_s18 }
   0xa   : > { %s67_s22 = ssub.s32 %s438_s19, %s491_s20  ;;  %p77_p0 = scmp.ne.s32.totalorder %s434_s18, %s430_s17 }
   0xb   : > { %p68_p1 = scmp.eq.s32.totalorder %s67_s22, 0  ;;  %p78_p2 = scmp.eq.s32.totalorder %s438_s19, 0 }
   0xc   : > { %p83_p3 = scmp.ne.s32.totalorder %s430_s17, %s426_s16  ;;  %p84_p4 = scmp.eq.s32.totalorder %s487_s0, 0 }
   0xd   : > { %s503_s23 = scalar_select %p68_p1, %s434_s18, %s70_s21  }
   0xe   : > { %p505_p5 = por %p78_p2, %p77_p0  ;;  %p509_p6 = por %p84_p4, %p83_p3 }
   0xf   : > { %p107_p7 = scmp.eq.s32.totalorder %s487_s0, 1  ;;  %p113_p8 = scmp.eq.s32.totalorder %s284_s1, 1 }
  0x10   : > { %p308_p10 = scmp.lt.s32.totalorder %s438_s19, 2  ;;  %s139_s28 = sand.u32 1, %s434_s18  }
  0x11   : > { %p516_p11 = por %p107_p7, %p77_p0  ;;  %p520_p12 = por %p113_p8, %p83_p3 }
  0x12   : > { %s288_s29 = sshll.u32 %s438_s19, 3  ;;  %s287_s30 = sshll.u32 %s139_s28, 3 }
  0x13   : > { %s147_s6 = scalar_lea.hbm %s595_s2, %s288_s29  ;;  %s143_s8 = scalar_lea.vmem [#allocation4], %s287_s30 }
  0x14   : > { %s149_s7 = sshll.u32 %s147_s6, 4  ;;  %s151_s9 = sshll.u32 %s143_s8, 4  ;;  %s150_s7 = int_to_ptr.hbm [resolvable:$true] %s149_s7  ;;  %s152_s9 = int_to_ptr.vmem [resolvable:$true] %s151_s9 }
  0x15   : > { %p531_p13 = pnand %p308_p10, %p505_p5  ;;  %p289_p0 = scmp.ge.s32.totalorder %s438_s19, 1 }
  0x16   : > { %p156_p1 = scmp.lt.s32.totalorder %s438_s19, 3  ;;  %s140_s11 = scalar_lea.sflag [#allocation5], %s139_s28 }
  0x17   : > { %s342_s12 = sshra.s32 %s150_s7, 4  ;;  %p346_p3 = pneg %p531_p13  ;;  %s343_s12 = int_to_ptr.hbm [resolvable:$true] %s342_s12 }
  0x18   : > { %s344_s13 = scalar_lea.hbm %s343_s12, 8  ;;  %s349_s1 = scalar_lea.hbm %s595_s2, 16 }
  0x19   : > { %p345_p2 = scmp.ne.s32.totalorder %s343_s12, %s344_s13  ;;  %p350_p5 = scmp.lt.s32.totalorder %s343_s12, %s595_s2 }
  0x1a   : > { %p351_p8 = scmp.lt.s32.totalorder %s349_s1, %s344_s13 }
  0x1b   : > { %p347_p4 = pnand %p346_p3, %p345_p2 }
  0x1c   : > { %p352_p10 = por %p351_p8, %p350_p5 }
  0x1d   : > { %p348_p7 = pneg %p347_p4 }
  0x1f   : > { %p353_p9 = pnand %p352_p10, %p348_p7 }
  0x21   : > { %356 = shalt.err (!%p353_p9)
}
  0x22   : > { %303 = dma.hbm_to_vmem [thread:$0]  (!%p531_p13), %s150_s7, 128, %s152_s9, %s140_s11  }
  0x23   : > { %p157_p2 = pnand %p289_p0, %p156_p1 }
  0x24   : > { %s552_s24 = sand.u32 (!%p157_p2), 1, %s430_s17  }
  0x25   : > { %160 = sbr.rel (%p157_p2) target bundleno = 59 (0x3b), region = 32  ;;  %s290_s28 = sshll.u32 (!%p157_p2), %s552_s24, 3 }
  0x26   : > { %s163_s29 = scalar_lea.sflag (!%p157_p2), [#allocation5], %s552_s24  ;;  %s166_s30 = scalar_lea.vmem (!%p157_p2), [#allocation4], %s290_s28 }
  0x2a   : > { %417 = dma.done.wait (%p509_p6), %s163_s29, 128  }
  0x2b   : > { %419 = vsyncadd (%p509_p6), %s163_s29, 4294967168  ;;  %s190_s4 = sld [smem:[#allocation2]]  ;;  %s293_s6 = sshll.u32 %s487_s0, 3  ;;  %v192_v0 = vld [vmem:[%s166_s30] sm:$0xff] }
  0x2c   : > { %s191_s5 = sld [smem:[#allocation3]]  ;;  %s209_s9 = scalar_lea.hbm %s596_s3, %s293_s6 }
  0x2d   : > { %s189_s10 = scalar_lea.vmem [#allocation7], %s290_s28  ;;  %s213_s12 = sshll.u32 %s209_s9, 4  ;;  %s214_s12 = int_to_ptr.hbm [resolvable:$true] %s213_s12 }
  0x2e   : > { %s211_s11 = sshll.u32 %s189_s10, 4  ;;  %s199_s25 = scalar_lea.sflag [#allocation6], %s552_s24  ;;  %s212_s11 = int_to_ptr.vmem [resolvable:$true] %s211_s11 }
  0x2f   : > { %s386_s13 = sshra.s32 %s214_s12, 4  ;;  %s392_s1 = scalar_lea.hbm %s596_s3, 16  ;;  %s387_s13 = int_to_ptr.hbm [resolvable:$true] %s386_s13 }
  0x30   : > { %s388_s0 = scalar_lea.hbm %s387_s13, 8  ;;  %p393_p0 = scmp.lt.s32.totalorder %s387_s13, %s596_s3 }
  0x31   : > { %v193_v1 = vstv %s190_s4  ;;  %p389_p6 = scmp.ne.s32.totalorder %s387_s13, %s388_s0  ;;  %p394_p1 = scmp.lt.s32.totalorder %s392_s1, %s388_s0 }
  0x32   : > { %v194_v2 = vmul.f32 %v193_v1, %v192_v0  ;;  %v195_v3 = vstv %s191_s5 }
  0x33   : > { %p390_p9 = pnand %p389_p6, %p516_p11  ;;  %p395_p3 = por %p394_p1, %p393_p0 }
  0x34   : > { %v196_v4 = vadd.f32 %v195_v3, %v194_v2 }
  0x35   : > { %p391_p13 = pneg %p390_p9 }
  0x36   : > { %197 = vst [vmem:[%s189_s10] sm:$0xff] %v196_v4 }
  0x37   : > { %p396_p4 = pnand %p395_p3, %p391_p13 }
  0x39   : > { %399 = shalt.err (!%p396_p4)
}
  0x3a   : > { %298 = dma.vmem_to_hbm [thread:$0]  (%p516_p11), %s212_s11, 128, %s214_s12, %s199_s25  }
  0x3b PF: > { %s225_s24 = sand.u32 1, %s426_s16   ;;  %p602_p7 = scmp.ge.s32.totalorder %s438_s19, 2 }
  0x3c   : > { %s226_s28 = scalar_lea.sflag [#allocation6], %s225_s24 }
  0x3d   : > { %p305_p5 = pnand %p602_p7, %p520_p12 }
  0x3f   : > { %p306_p8 = pneg %p305_p5 }
  0x41   : > { %421 = dma.done.wait (%p306_p8), %s226_s28, 128  }
  0x42   : > { %423 = vsyncadd (%p306_p8), %s226_s28, 4294967168  ;;  %p18_p10 = scmp.ge.s32.totalorder %s491_s20, 4   ;;  %s603_s16 = smov %s430_s17 }
  0x43   : > { %s604_s17 = smov %s434_s18  ;;  %s605_s18 = smov %s503_s23 }
  0x44   : > { %s606_s19 = smov %s491_s20  ;;  %20 = sbr.rel (!%p18_p10) target bundleno = 8 (0x8), region = 77 }
  0x49   :  { %232 = vsyncpa [#allocation5], 1 }
  0x4a   :  { %234 = vsyncpa [#allocation5 + $0x1], 1 }
  0x4b   :  { %235 = vsyncpa [#allocation6], 1 }
  0x4c   :  { %237 = vsyncpa [#allocation6 + $0x1], 1 }

</bundles_post_ra>
